<compile_context>
chip_gen: v6e
topology: v6e:2x2x1
jax: 0.10.0
libtpu: 0.0.40
codegen_flags: <defaults>
</compile_context>

<pallas_src>
import functools

import jax
import jax.numpy as jnp
from jax import lax
from jax.experimental import pallas as pl
from jax.experimental.pallas import tpu as pltpu


# ----------------------------------------------------------------------------
# helpers
# ----------------------------------------------------------------------------
def _cdiv(a, b):
    return (a + b - 1) // b


def _round_up(x, m):
    return _cdiv(x, m) * m


def _log_sigmoid(x):
    # numerically-stable logsigmoid(x) = min(x, 0) - log1p(exp(-|x|))
    return jnp.minimum(x, 0.0) - jnp.log1p(jnp.exp(-jnp.abs(x)))


def _vmem_capacity_bytes():
    """Physical VMEM of the current generation (64 MiB v7x, 128 MiB v5e/v6e)."""
    try:
        cap = int(pltpu.get_tpu_info().vmem_capacity_bytes)
        if cap > 0:
            return cap
    except Exception:
        pass
    return 64 * 1024 * 1024          # conservative fallback (v7x per-TC VMEM)


def _vmem_limit_bytes(cap):
    # Leave headroom; 96 MiB on 128 MiB parts, 48 MiB on v7x's 64 MiB.
    return int(min(cap * 3 // 4, 96 * 1024 * 1024))


def _padded_vmem_bytes(rows, cols, itemsize):
    """VMEM footprint of a (rows, cols) tile incl. (8, 128) tile padding."""
    return _round_up(rows, 8) * max(_round_up(cols, 128), 128) * itemsize


# ----------------------------------------------------------------------------
# fused path: labels in SMEM, vocab tables resident in VMEM, in-kernel gather
# ----------------------------------------------------------------------------
def _fused_skipgram_kernel(in_lab_ref, ctx_lab_ref,      # SMEM scalar prefetch
                           in_tab_ref, out_tab_ref,      # VMEM-resident (V, D)
                           out_ref,                      # (1, 1, TB) f32
                           ctx_buf,                      # VMEM (C, D) scratch
                           *, num_pos):
    i = pl.program_id(0)
    tb = out_ref.shape[-1]
    num_ctx, _ = ctx_buf.shape

    # Loop-invariant constants (hoisted out of the row loop).
    slot = lax.broadcasted_iota(jnp.int32, (num_ctx, 1), 0)
    sign = jnp.where(slot < num_pos, 1.0, -1.0)               # +1 pos / -1 neg
    lane = lax.broadcasted_iota(jnp.int32, (1, tb), 1)

    def row_body(r, acc):
        b = i * tb + r                                        # global batch row
        cidx = in_lab_ref[b]
        center = in_tab_ref[pl.ds(cidx, 1), :].astype(jnp.float32)     # (1, D)

        # Gather this row's C context embeddings into VMEM scratch.  Static
        # unroll over C: scratch stores use static sublane offsets; only the
        # table reads use a dynamic (SMEM-scalar) sublane index.
        base = b * num_ctx
        for c in range(num_ctx):
            idx = ctx_lab_ref[base + c]
            ctx_buf[pl.ds(c, 1), :] = out_tab_ref[pl.ds(idx, 1), :]

        ctx = ctx_buf[...].astype(jnp.float32)                          # (C, D)
        # VPU multiply + XLU lane reduce (deliberately not MXU — memory bound).
        scores = jnp.sum(ctx * center, axis=1, keepdims=True)          # (C, 1)
        loss_r = -jnp.sum(_log_sigmoid(scores * sign))                 # scalar
        # Place loss_r at lane r of the (1, TB) accumulator: lane-dense output
        # with no dynamic-lane store and no transpose.
        return jnp.where(lane == r, loss_r, acc)

    acc = lax.fori_loop(0, tb, row_body, jnp.zeros((1, tb), jnp.float32))
    out_ref[...] = acc.reshape(out_ref.shape)


def _choose_block_b_fused(batch, *, target_tiles=8, max_block=1024):
    # HBM/VMEM cost per tile is tiny in the fused path, so block_b is chosen
    # for grid granularity: keep several grid steps (pipelining + v7x megacore)
    # while amortizing the ~0.35 us per-step overhead.
    blk = _round_up(_cdiv(batch, target_tiles), 8)
    return max(8, min(max_block, blk))


def _skipgram_loss_fused(in_weight, out_weight, input_labels, ctx_labels,
                         num_pos, *, block_b, vmem_cap):
    V, D = in_weight.shape
    B, C = ctx_labels.shape

    block_b = max(8, _round_up(block_b, 8))
    Bp = _round_up(B, block_b)
    grid_b = Bp // block_b

    # Pad labels with index 0 (valid row); padded losses are sliced off below.
    in_lab = jnp.pad(input_labels.astype(jnp.int32), (0, Bp - B))
    ctx_lab = jnp.pad(ctx_labels.astype(jnp.int32).reshape(-1),
                      (0, (Bp - B) * C))

    tab_bytes = (in_weight.size * in_weight.dtype.itemsize
                 + out_weight.size * out_weight.dtype.itemsize)
    cost = pl.CostEstimate(
        flops=2 * Bp * C * D + 8 * Bp * C,
        transcendentals=2 * Bp * C,
        bytes_accessed=tab_bytes + 4 * (Bp + Bp * C) + 4 * Bp,
    )

    out = pl.pallas_call(
        functools.partial(_fused_skipgram_kernel, num_pos=num_pos),
        out_shape=jax.ShapeDtypeStruct((grid_b, 1, block_b), jnp.float32),
        grid_spec=pltpu.PrefetchScalarGridSpec(
            num_scalar_prefetch=2,
            grid=(grid_b,),
            in_specs=[
                # Full tables, constant block index -> fetched once, resident.
                pl.BlockSpec((V, D), lambda i, il, cl: (0, 0)),
                pl.BlockSpec((V, D), lambda i, il, cl: (0, 0)),
            ],
            out_specs=pl.BlockSpec((1, 1, block_b), lambda i, il, cl: (i, 0, 0)),
            scratch_shapes=[pltpu.VMEM((C, D), out_weight.dtype)],
        ),
        compiler_params=pltpu.CompilerParams(
            dimension_semantics=("parallel",),          # megacore on v7x
            vmem_limit_bytes=_vmem_limit_bytes(vmem_cap),
        ),
        cost_estimate=cost,
    )(in_lab, ctx_lab, in_weight, out_weight)
    return out.reshape(Bp)[:B]


# ----------------------------------------------------------------------------
# fallback path (vocab tables too big for VMEM): XLA gather + tiled loss kernel
# ----------------------------------------------------------------------------
def _unfused_skipgram_kernel(in_ref, ctx_ref, out_ref, *, num_pos, c_chunk):
    """in_ref: (TB, D); ctx_ref: (TB, C, D); out_ref: (TB, 1)."""
    tb, num_ctx, _ = ctx_ref.shape
    in_emb = in_ref[...].astype(jnp.float32)                      # (TB, D)

    # Chunk over the context axis so the live f32 working set is
    # TB * c_chunk * D instead of TB * C * D (static slices -> safe lowering).
    acc = jnp.zeros((tb, 1), jnp.float32)
    for start in range(0, num_ctx, c_chunk):
        stop = min(start + c_chunk, num_ctx)
        ctx = ctx_ref[:, start:stop, :].astype(jnp.float32)       # (TB, cs, D)
        scores = jnp.sum(ctx * in_emb[:, None, :], axis=-1)       # (TB, cs)
        col = lax.broadcasted_iota(jnp.int32, (1, stop - start), 1) + start
        sign = jnp.where(col < num_pos, 1.0, -1.0)
        acc = acc + jnp.sum(_log_sigmoid(scores * sign), axis=1, keepdims=True)

    # TODO(synk): output stays (TB, 1) (sublane-oriented) in the fallback; a
    # lane-dense layout needs an in-kernel transpose and the win is small.
    out_ref[...] = -acc


def _choose_block_b_unfused(batch, num_ctx, dim, vmem_cap, stream_itemsize,
                            *, c_chunk=8):
    d_pad = max(_round_up(dim, 128), 128)
    # double-buffered streamed inputs + f32 chunk working set, per batch row
    per_row = (2 * stream_itemsize * (num_ctx + 1) * d_pad
               + 4 * (2 * c_chunk * d_pad + d_pad + 2 * c_chunk))
    budget = int(vmem_cap * 0.4)
    blk = max(8, min(512, (budget // max(per_row, 1)) // 8 * 8))
    # Keep ~4 grid steps so the DMA pipeline and both v7x TensorCores stay busy.
    blk = min(blk, max(8, _round_up(_cdiv(batch, 4), 8)))
    return blk


def _skipgram_loss_unfused(in_rows, ctx_rows, num_pos, *, block_b, vmem_cap,
                           c_chunk=8):
    B, D = in_rows.shape
    C = ctx_rows.shape[1]

    block_b = max(8, _round_up(block_b, 8))
    Bp = _round_up(B, block_b)
    if Bp != B:
        # Zero-padded rows give finite garbage losses, sliced off below.
        in_rows = jnp.pad(in_rows, ((0, Bp - B), (0, 0)))
        ctx_rows = jnp.pad(ctx_rows, ((0, Bp - B), (0, 0), (0, 0)))
    grid_b = Bp // block_b

    bytes_in = (Bp * D * in_rows.dtype.itemsize
                + Bp * C * D * ctx_rows.dtype.itemsize)
    cost = pl.CostEstimate(
        flops=2 * Bp * C * D + 8 * Bp * C,
        transcendentals=2 * Bp * C,
        bytes_accessed=bytes_in + Bp * 4,
    )

    out = pl.pallas_call(
        functools.partial(_unfused_skipgram_kernel,
                          num_pos=num_pos, c_chunk=c_chunk),
        out_shape=jax.ShapeDtypeStruct((Bp, 1), jnp.float32),
        grid_spec=pl.GridSpec(
            grid=(grid_b,),
            in_specs=[
                pl.BlockSpec((block_b, D), lambda i: (i, 0)),
                pl.BlockSpec((block_b, C, D), lambda i: (i, 0, 0)),
            ],
            out_specs=pl.BlockSpec((block_b, 1), lambda i: (i, 0)),
        ),
        compiler_params=pltpu.CompilerParams(
            dimension_semantics=("parallel",),
            vmem_limit_bytes=_vmem_limit_bytes(vmem_cap),
        ),
        cost_estimate=cost,
    )(in_rows, ctx_rows)
    return out[:B, 0]


# ----------------------------------------------------------------------------
# EmbeddingModel.forward
# ----------------------------------------------------------------------------
def embedding_model_forward(in_weight, out_weight,
                            input_labels, pos_labels, neg_labels,
                            *, block_b=None, force_unfused=False,
                            stream_dtype=jnp.bfloat16):
    """Mirrors EmbeddingModel.forward.

    in_weight/out_weight: (V, D) embedding tables (kept in their native dtype).
    input_labels: (B,)     int   center words
    pos_labels:   (B, 2c)  int   positive context words
    neg_labels:   (B, 2cK) int   negative samples
    returns:      (B,)     f32   per-example loss
    """
    B = input_labels.shape[0]
    P = pos_labels.shape[1]
    ctx_labels = jnp.concatenate([pos_labels, neg_labels], axis=1)   # (B, P+N)
    C = ctx_labels.shape[1]
    V, D = in_weight.shape

    cap = _vmem_capacity_bytes()
    # Both tables, double-buffered by the pipeline, incl. (8,128) lane padding.
    tables_vmem = 2 * (_padded_vmem_bytes(V, D, in_weight.dtype.itemsize)
                       + _padded_vmem_bytes(V, D, out_weight.dtype.itemsize))
    use_fused = (not force_unfused) and (tables_vmem <= cap // 2)

    if use_fused:
        blk = block_b if block_b is not None else _choose_block_b_fused(B)
        return _skipgram_loss_fused(in_weight, out_weight,
                                    input_labels, ctx_labels, P,
                                    block_b=blk, vmem_cap=cap)

    # Big-vocab fallback: gather only the needed rows with XLA (no full-table
    # recast), optionally stream them as bf16, run the tiled loss kernel.
    in_rows = in_weight[input_labels].astype(stream_dtype)      # (B, D)
    ctx_rows = out_weight[ctx_labels].astype(stream_dtype)      # (B, C, D)
    blk = block_b if block_b is not None else _choose_block_b_unfused(
        B, C, D, cap, jnp.dtype(stream_dtype).itemsize)
    return _skipgram_loss_unfused(in_rows, ctx_rows, P,
                                  block_b=blk, vmem_cap=cap)


def _reference_forward(in_weight, out_weight, input_labels, pos_labels, neg_labels):
    in_emb = in_weight[input_labels]
    pos = out_weight[pos_labels]
    neg = out_weight[neg_labels]
    pos_score = jnp.einsum("bpd,bd->bp", pos, in_emb)
    neg_score = jnp.einsum("bnd,bd->bn", neg, -in_emb)
    log_pos = jnp.sum(jax.nn.log_sigmoid(pos_score), axis=1)
    log_neg = jnp.sum(jax.nn.log_sigmoid(neg_score), axis=1)
    return -(log_pos + log_neg)


if __name__ == "__main__":
    # Small, module-consistent shapes; batch not a multiple of the tile so the
    # padding path and a multi-step grid are exercised.
    vocab_size = 50
    embed_size = 64
    batch_size = 20
    c = 3          # context window half-size  -> P = 2*c = 6
    K = 5          # negatives per positive    -> N = 2*c*K = 30

    key = jax.random.PRNGKey(0)
    k_in, k_out, k_inp, k_pos, k_neg = jax.random.split(key, 5)

    initrange = 0.5 / embed_size
    in_weight = jax.random.uniform(
        k_in, (vocab_size, embed_size), jnp.float32, -initrange, initrange)
    out_weight = jax.random.uniform(
        k_out, (vocab_size, embed_size), jnp.float32, -initrange, initrange)

    input_labels = jax.random.randint(k_inp, (batch_size,), 0, vocab_size, jnp.int32)
    pos_labels = jax.random.randint(k_pos, (batch_size, 2 * c), 0, vocab_size, jnp.int32)
    neg_labels = jax.random.randint(k_neg, (batch_size, 2 * c * K), 0, vocab_size, jnp.int32)

    ref = _reference_forward(
        in_weight, out_weight, input_labels, pos_labels, neg_labels)

    # 1) Fused-gather path (tables VMEM-resident, labels in SMEM), f32 compute.
    loss_fused = embedding_model_forward(
        in_weight, out_weight, input_labels, pos_labels, neg_labels)
    loss_fused = jax.block_until_ready(loss_fused)
    assert loss_fused.shape == (batch_size,)
    assert jnp.allclose(loss_fused, ref, atol=1e-4, rtol=1e-4), (loss_fused, ref)

    # 2) Forced big-vocab fallback (XLA row gather + tiled Pallas loss kernel,
    #    gathered rows streamed as bf16).
    loss_unfused = embedding_model_forward(
        in_weight, out_weight, input_labels, pos_labels, neg_labels,
        force_unfused=True)
    loss_unfused = jax.block_until_ready(loss_unfused)
    assert loss_unfused.shape == (batch_size,)
    assert jnp.allclose(loss_unfused, ref, atol=2e-3, rtol=1e-2), (loss_unfused, ref)

    print("KERNEL_OK")
</pallas_src>

<mosaic_0001>
module attributes {stable_mosaic.version = 11 : i64} {
  func.func @_fused_skipgram_kernel(%arg0: i32, %arg1: memref<24xi32, #tpu.memory_space<smem>>, %arg2: memref<864xi32, #tpu.memory_space<smem>>, %arg3: memref<50x64xf32, #tpu.memory_space<vmem>>, %arg4: memref<50x64xf32, #tpu.memory_space<vmem>>, %arg5: memref<1x1x8xf32, #tpu.memory_space<vmem>>, %arg6: memref<36x64xf32, #tpu.memory_space<vmem>>) attributes {dimension_semantics = [#tpu.dimension_semantics<parallel>], iteration_bounds = array<i64: 3>, scalar_prefetch = 2 : i64, scratch_operands = 1 : i64, tpu.core_type = #tpu.core_type<tc>, window_params = [{pipeline_mode = #tpu.pipeline_mode<synchronous>, transform_indices = @transform_0, window_bounds = array<i64: 50, 64>}, {pipeline_mode = #tpu.pipeline_mode<synchronous>, transform_indices = @transform_1, window_bounds = array<i64: 50, 64>}, {transform_indices = @transform_2, window_bounds = array<i64: 1, 1, 8>}]} {
    %0 = tpu.iota {dimensions = array<i32: 0>} : vector<36x1xi32>
    %c6_i32 = arith.constant 6 : i32
    %1 = vector.broadcast %c6_i32 : i32 to vector<36x1xi32>
    %2 = arith.cmpi slt, %0, %1 : vector<36x1xi32>
    %cst = arith.constant 1.000000e+00 : f32
    %cst_0 = arith.constant -1.000000e+00 : f32
    %3 = vector.broadcast %cst : f32 to vector<36x1xf32>
    %4 = vector.broadcast %cst_0 : f32 to vector<36x1xf32>
    %5 = arith.select %2, %3, %4 : vector<36x1xi1>, vector<36x1xf32>
    %6 = tpu.iota {dimensions = array<i32: 1>} : vector<1x8xi32>
    %cst_1 = arith.constant 0.000000e+00 : f32
    %7 = vector.broadcast %cst_1 : f32 to vector<1x8xf32>
    %c0_i32 = arith.constant 0 : i32
    %c8_i32 = arith.constant 8 : i32
    %8 = arith.addi %c0_i32, %c8_i32 : i32
    %c1_i32 = arith.constant 1 : i32
    %9 = scf.for %arg7 = %c0_i32 to %8 step %c1_i32 iter_args(%arg8 = %7) -> (vector<1x8xf32>)  : i32 {
      %c8_i32_5 = arith.constant 8 : i32
      %12 = arith.muli %arg0, %c8_i32_5 : i32
      %13 = arith.addi %12, %arg7 : i32
      %14 = arith.index_cast %13 : i32 to index
      %15 = memref.load %arg1[%14] : memref<24xi32, #tpu.memory_space<smem>>
      %16 = arith.index_cast %15 : i32 to index
      %c0_6 = arith.constant 0 : index
      %17 = vector.load %arg3[%16, %c0_6] : memref<50x64xf32, #tpu.memory_space<vmem>>, vector<1x64xf32>
      %c36_i32 = arith.constant 36 : i32
      %18 = arith.muli %13, %c36_i32 : i32
      %c0_i32_7 = arith.constant 0 : i32
      %19 = arith.addi %18, %c0_i32_7 : i32
      %20 = arith.index_cast %19 : i32 to index
      %21 = memref.load %arg2[%20] : memref<864xi32, #tpu.memory_space<smem>>
      %22 = arith.index_cast %21 : i32 to index
      %c0_8 = arith.constant 0 : index
      %23 = vector.load %arg4[%22, %c0_8] : memref<50x64xf32, #tpu.memory_space<vmem>>, vector<1x64xf32>
      %c0_9 = arith.constant 0 : index
      %c0_10 = arith.constant 0 : index
      %24 = vector.load %arg6[%c0_9, %c0_10] : memref<36x64xf32, #tpu.memory_space<vmem>>, vector<1x64xf32>
      tpu.vector_store %arg6[%c0_9, %c0_10], %23 {strides = array<i32>} : memref<36x64xf32, #tpu.memory_space<vmem>>, vector<1x64xf32>,
      %c1_i32_11 = arith.constant 1 : i32
      %25 = arith.addi %18, %c1_i32_11 : i32
      %26 = arith.index_cast %25 : i32 to index
      %27 = memref.load %arg2[%26] : memref<864xi32, #tpu.memory_space<smem>>
      %28 = arith.index_cast %27 : i32 to index
      %c0_12 = arith.constant 0 : index
      %29 = vector.load %arg4[%28, %c0_12] : memref<50x64xf32, #tpu.memory_space<vmem>>, vector<1x64xf32>
      %c1 = arith.constant 1 : index
      %c0_13 = arith.constant 0 : index
      %30 = vector.load %arg6[%c1, %c0_13] : memref<36x64xf32, #tpu.memory_space<vmem>>, vector<1x64xf32>
      tpu.vector_store %arg6[%c1, %c0_13], %29 {strides = array<i32>} : memref<36x64xf32, #tpu.memory_space<vmem>>, vector<1x64xf32>,
      %c2_i32 = arith.constant 2 : i32
      %31 = arith.addi %18, %c2_i32 : i32
      %32 = arith.index_cast %31 : i32 to index
      %33 = memref.load %arg2[%32] : memref<864xi32, #tpu.memory_space<smem>>
      %34 = arith.index_cast %33 : i32 to index
      %c0_14 = arith.constant 0 : index
      %35 = vector.load %arg4[%34, %c0_14] : memref<50x64xf32, #tpu.memory_space<vmem>>, vector<1x64xf32>
      %c2 = arith.constant 2 : index
      %c0_15 = arith.constant 0 : index
      %36 = vector.load %arg6[%c2, %c0_15] : memref<36x64xf32, #tpu.memory_space<vmem>>, vector<1x64xf32>
      tpu.vector_store %arg6[%c2, %c0_15], %35 {strides = array<i32>} : memref<36x64xf32, #tpu.memory_space<vmem>>, vector<1x64xf32>,
      %c3_i32 = arith.constant 3 : i32
      %37 = arith.addi %18, %c3_i32 : i32
      %38 = arith.index_cast %37 : i32 to index
      %39 = memref.load %arg2[%38] : memref<864xi32, #tpu.memory_space<smem>>
      %40 = arith.index_cast %39 : i32 to index
      %c0_16 = arith.constant 0 : index
      %41 = vector.load %arg4[%40, %c0_16] : memref<50x64xf32, #tpu.memory_space<vmem>>, vector<1x64xf32>
      %c3 = arith.constant 3 : index
      %c0_17 = arith.constant 0 : index
      %42 = vector.load %arg6[%c3, %c0_17] : memref<36x64xf32, #tpu.memory_space<vmem>>, vector<1x64xf32>
      tpu.vector_store %arg6[%c3, %c0_17], %41 {strides = array<i32>} : memref<36x64xf32, #tpu.memory_space<vmem>>, vector<1x64xf32>,
      %c4_i32 = arith.constant 4 : i32
      %43 = arith.addi %18, %c4_i32 : i32
      %44 = arith.index_cast %43 : i32 to index
      %45 = memref.load %arg2[%44] : memref<864xi32, #tpu.memory_space<smem>>
      %46 = arith.index_cast %45 : i32 to index
      %c0_18 = arith.constant 0 : index
      %47 = vector.load %arg4[%46, %c0_18] : memref<50x64xf32, #tpu.memory_space<vmem>>, vector<1x64xf32>
      %c4 = arith.constant 4 : index
      %c0_19 = arith.constant 0 : index
      %48 = vector.load %arg6[%c4, %c0_19] : memref<36x64xf32, #tpu.memory_space<vmem>>, vector<1x64xf32>
      tpu.vector_store %arg6[%c4, %c0_19], %47 {strides = array<i32>} : memref<36x64xf32, #tpu.memory_space<vmem>>, vector<1x64xf32>,
      %c5_i32 = arith.constant 5 : i32
      %49 = arith.addi %18, %c5_i32 : i32
      %50 = arith.index_cast %49 : i32 to index
      %51 = memref.load %arg2[%50] : memref<864xi32, #tpu.memory_space<smem>>
      %52 = arith.index_cast %51 : i32 to index
      %c0_20 = arith.constant 0 : index
      %53 = vector.load %arg4[%52, %c0_20] : memref<50x64xf32, #tpu.memory_space<vmem>>, vector<1x64xf32>
      %c5 = arith.constant 5 : index
      %c0_21 = arith.constant 0 : index
      %54 = vector.load %arg6[%c5, %c0_21] : memref<36x64xf32, #tpu.memory_space<vmem>>, vector<1x64xf32>
      tpu.vector_store %arg6[%c5, %c0_21], %53 {strides = array<i32>} : memref<36x64xf32, #tpu.memory_space<vmem>>, vector<1x64xf32>,
      %c6_i32_22 = arith.constant 6 : i32
      %55 = arith.addi %18, %c6_i32_22 : i32
      %56 = arith.index_cast %55 : i32 to index
      %57 = memref.load %arg2[%56] : memref<864xi32, #tpu.memory_space<smem>>
      %58 = arith.index_cast %57 : i32 to index
      %c0_23 = arith.constant 0 : index
      %59 = vector.load %arg4[%58, %c0_23] : memref<50x64xf32, #tpu.memory_space<vmem>>, vector<1x64xf32>
      %c6 = arith.constant 6 : index
      %c0_24 = arith.constant 0 : index
      %60 = vector.load %arg6[%c6, %c0_24] : memref<36x64xf32, #tpu.memory_space<vmem>>, vector<1x64xf32>
      tpu.vector_store %arg6[%c6, %c0_24], %59 {strides = array<i32>} : memref<36x64xf32, #tpu.memory_space<vmem>>, vector<1x64xf32>,
      %c7_i32 = arith.constant 7 : i32
      %61 = arith.addi %18, %c7_i32 : i32
      %62 = arith.index_cast %61 : i32 to index
      %63 = memref.load %arg2[%62] : memref<864xi32, #tpu.memory_space<smem>>
      %64 = arith.index_cast %63 : i32 to index
      %c0_25 = arith.constant 0 : index
      %65 = vector.load %arg4[%64, %c0_25] : memref<50x64xf32, #tpu.memory_space<vmem>>, vector<1x64xf32>
      %c7 = arith.constant 7 : index
      %c0_26 = arith.constant 0 : index
      %66 = vector.load %arg6[%c7, %c0_26] : memref<36x64xf32, #tpu.memory_space<vmem>>, vector<1x64xf32>
      tpu.vector_store %arg6[%c7, %c0_26], %65 {strides = array<i32>} : memref<36x64xf32, #tpu.memory_space<vmem>>, vector<1x64xf32>,
      %c8_i32_27 = arith.constant 8 : i32
      %67 = arith.addi %18, %c8_i32_27 : i32
      %68 = arith.index_cast %67 : i32 to index
      %69 = memref.load %arg2[%68] : memref<864xi32, #tpu.memory_space<smem>>
      %70 = arith.index_cast %69 : i32 to index
      %c0_28 = arith.constant 0 : index
      %71 = vector.load %arg4[%70, %c0_28] : memref<50x64xf32, #tpu.memory_space<vmem>>, vector<1x64xf32>
      %c8 = arith.constant 8 : index
      %c0_29 = arith.constant 0 : index
      %72 = vector.load %arg6[%c8, %c0_29] : memref<36x64xf32, #tpu.memory_space<vmem>>, vector<1x64xf32>
      tpu.vector_store %arg6[%c8, %c0_29], %71 {strides = array<i32>} : memref<36x64xf32, #tpu.memory_space<vmem>>, vector<1x64xf32>,
      %c9_i32 = arith.constant 9 : i32
      %73 = arith.addi %18, %c9_i32 : i32
      %74 = arith.index_cast %73 : i32 to index
      %75 = memref.load %arg2[%74] : memref<864xi32, #tpu.memory_space<smem>>
      %76 = arith.index_cast %75 : i32 to index
      %c0_30 = arith.constant 0 : index
      %77 = vector.load %arg4[%76, %c0_30] : memref<50x64xf32, #tpu.memory_space<vmem>>, vector<1x64xf32>
      %c9 = arith.constant 9 : index
      %c0_31 = arith.constant 0 : index
      %78 = vector.load %arg6[%c9, %c0_31] : memref<36x64xf32, #tpu.memory_space<vmem>>, vector<1x64xf32>
      tpu.vector_store %arg6[%c9, %c0_31], %77 {strides = array<i32>} : memref<36x64xf32, #tpu.memory_space<vmem>>, vector<1x64xf32>,
      %c10_i32 = arith.constant 10 : i32
      %79 = arith.addi %18, %c10_i32 : i32
      %80 = arith.index_cast %79 : i32 to index
      %81 = memref.load %arg2[%80] : memref<864xi32, #tpu.memory_space<smem>>
      %82 = arith.index_cast %81 : i32 to index
      %c0_32 = arith.constant 0 : index
      %83 = vector.load %arg4[%82, %c0_32] : memref<50x64xf32, #tpu.memory_space<vmem>>, vector<1x64xf32>
      %c10 = arith.constant 10 : index
      %c0_33 = arith.constant 0 : index
      %84 = vector.load %arg6[%c10, %c0_33] : memref<36x64xf32, #tpu.memory_space<vmem>>, vector<1x64xf32>
      tpu.vector_store %arg6[%c10, %c0_33], %83 {strides = array<i32>} : memref<36x64xf32, #tpu.memory_space<vmem>>, vector<1x64xf32>,
      %c11_i32 = arith.constant 11 : i32
      %85 = arith.addi %18, %c11_i32 : i32
      %86 = arith.index_cast %85 : i32 to index
      %87 = memref.load %arg2[%86] : memref<864xi32, #tpu.memory_space<smem>>
      %88 = arith.index_cast %87 : i32 to index
      %c0_34 = arith.constant 0 : index
      %89 = vector.load %arg4[%88, %c0_34] : memref<50x64xf32, #tpu.memory_space<vmem>>, vector<1x64xf32>
      %c11 = arith.constant 11 : index
      %c0_35 = arith.constant 0 : index
      %90 = vector.load %arg6[%c11, %c0_35] : memref<36x64xf32, #tpu.memory_space<vmem>>, vector<1x64xf32>
      tpu.vector_store %arg6[%c11, %c0_35], %89 {strides = array<i32>} : memref<36x64xf32, #tpu.memory_space<vmem>>, vector<1x64xf32>,
      %c12_i32 = arith.constant 12 : i32
      %91 = arith.addi %18, %c12_i32 : i32
      %92 = arith.index_cast %91 : i32 to index
      %93 = memref.load %arg2[%92] : memref<864xi32, #tpu.memory_space<smem>>
      %94 = arith.index_cast %93 : i32 to index
      %c0_36 = arith.constant 0 : index
      %95 = vector.load %arg4[%94, %c0_36] : memref<50x64xf32, #tpu.memory_space<vmem>>, vector<1x64xf32>
      %c12 = arith.constant 12 : index
      %c0_37 = arith.constant 0 : index
      %96 = vector.load %arg6[%c12, %c0_37] : memref<36x64xf32, #tpu.memory_space<vmem>>, vector<1x64xf32>
      tpu.vector_store %arg6[%c12, %c0_37], %95 {strides = array<i32>} : memref<36x64xf32, #tpu.memory_space<vmem>>, vector<1x64xf32>,
      %c13_i32 = arith.constant 13 : i32
      %97 = arith.addi %18, %c13_i32 : i32
      %98 = arith.index_cast %97 : i32 to index
      %99 = memref.load %arg2[%98] : memref<864xi32, #tpu.memory_space<smem>>
      %100 = arith.index_cast %99 : i32 to index
      %c0_38 = arith.constant 0 : index
      %101 = vector.load %arg4[%100, %c0_38] : memref<50x64xf32, #tpu.memory_space<vmem>>, vector<1x64xf32>
      %c13 = arith.constant 13 : index
      %c0_39 = arith.constant 0 : index
      %102 = vector.load %arg6[%c13, %c0_39] : memref<36x64xf32, #tpu.memory_space<vmem>>, vector<1x64xf32>
      tpu.vector_store %arg6[%c13, %c0_39], %101 {strides = array<i32>} : memref<36x64xf32, #tpu.memory_space<vmem>>, vector<1x64xf32>,
      %c14_i32 = arith.constant 14 : i32
      %103 = arith.addi %18, %c14_i32 : i32
      %104 = arith.index_cast %103 : i32 to index
      %105 = memref.load %arg2[%104] : memref<864xi32, #tpu.memory_space<smem>>
      %106 = arith.index_cast %105 : i32 to index
      %c0_40 = arith.constant 0 : index
      %107 = vector.load %arg4[%106, %c0_40] : memref<50x64xf32, #tpu.memory_space<vmem>>, vector<1x64xf32>
      %c14 = arith.constant 14 : index
      %c0_41 = arith.constant 0 : index
      %108 = vector.load %arg6[%c14, %c0_41] : memref<36x64xf32, #tpu.memory_space<vmem>>, vector<1x64xf32>
      tpu.vector_store %arg6[%c14, %c0_41], %107 {strides = array<i32>} : memref<36x64xf32, #tpu.memory_space<vmem>>, vector<1x64xf32>,
      %c15_i32 = arith.constant 15 : i32
      %109 = arith.addi %18, %c15_i32 : i32
      %110 = arith.index_cast %109 : i32 to index
      %111 = memref.load %arg2[%110] : memref<864xi32, #tpu.memory_space<smem>>
      %112 = arith.index_cast %111 : i32 to index
      %c0_42 = arith.constant 0 : index
      %113 = vector.load %arg4[%112, %c0_42] : memref<50x64xf32, #tpu.memory_space<vmem>>, vector<1x64xf32>
      %c15 = arith.constant 15 : index
      %c0_43 = arith.constant 0 : index
      %114 = vector.load %arg6[%c15, %c0_43] : memref<36x64xf32, #tpu.memory_space<vmem>>, vector<1x64xf32>
      tpu.vector_store %arg6[%c15, %c0_43], %113 {strides = array<i32>} : memref<36x64xf32, #tpu.memory_space<vmem>>, vector<1x64xf32>,
      %c16_i32 = arith.constant 16 : i32
      %115 = arith.addi %18, %c16_i32 : i32
      %116 = arith.index_cast %115 : i32 to index
      %117 = memref.load %arg2[%116] : memref<864xi32, #tpu.memory_space<smem>>
      %118 = arith.index_cast %117 : i32 to index
      %c0_44 = arith.constant 0 : index
      %119 = vector.load %arg4[%118, %c0_44] : memref<50x64xf32, #tpu.memory_space<vmem>>, vector<1x64xf32>
      %c16 = arith.constant 16 : index
      %c0_45 = arith.constant 0 : index
      %120 = vector.load %arg6[%c16, %c0_45] : memref<36x64xf32, #tpu.memory_space<vmem>>, vector<1x64xf32>
      tpu.vector_store %arg6[%c16, %c0_45], %119 {strides = array<i32>} : memref<36x64xf32, #tpu.memory_space<vmem>>, vector<1x64xf32>,
      %c17_i32 = arith.constant 17 : i32
      %121 = arith.addi %18, %c17_i32 : i32
      %122 = arith.index_cast %121 : i32 to index
      %123 = memref.load %arg2[%122] : memref<864xi32, #tpu.memory_space<smem>>
      %124 = arith.index_cast %123 : i32 to index
      %c0_46 = arith.constant 0 : index
      %125 = vector.load %arg4[%124, %c0_46] : memref<50x64xf32, #tpu.memory_space<vmem>>, vector<1x64xf32>
      %c17 = arith.constant 17 : index
      %c0_47 = arith.constant 0 : index
      %126 = vector.load %arg6[%c17, %c0_47] : memref<36x64xf32, #tpu.memory_space<vmem>>, vector<1x64xf32>
      tpu.vector_store %arg6[%c17, %c0_47], %125 {strides = array<i32>} : memref<36x64xf32, #tpu.memory_space<vmem>>, vector<1x64xf32>,
      %c18_i32 = arith.constant 18 : i32
      %127 = arith.addi %18, %c18_i32 : i32
      %128 = arith.index_cast %127 : i32 to index
      %129 = memref.load %arg2[%128] : memref<864xi32, #tpu.memory_space<smem>>
      %130 = arith.index_cast %129 : i32 to index
      %c0_48 = arith.constant 0 : index
      %131 = vector.load %arg4[%130, %c0_48] : memref<50x64xf32, #tpu.memory_space<vmem>>, vector<1x64xf32>
      %c18 = arith.constant 18 : index
      %c0_49 = arith.constant 0 : index
      %132 = vector.load %arg6[%c18, %c0_49] : memref<36x64xf32, #tpu.memory_space<vmem>>, vector<1x64xf32>
      tpu.vector_store %arg6[%c18, %c0_49], %131 {strides = array<i32>} : memref<36x64xf32, #tpu.memory_space<vmem>>, vector<1x64xf32>,
      %c19_i32 = arith.constant 19 : i32
      %133 = arith.addi %18, %c19_i32 : i32
      %134 = arith.index_cast %133 : i32 to index
      %135 = memref.load %arg2[%134] : memref<864xi32, #tpu.memory_space<smem>>
      %136 = arith.index_cast %135 : i32 to index
      %c0_50 = arith.constant 0 : index
      %137 = vector.load %arg4[%136, %c0_50] : memref<50x64xf32, #tpu.memory_space<vmem>>, vector<1x64xf32>
      %c19 = arith.constant 19 : index
      %c0_51 = arith.constant 0 : index
      %138 = vector.load %arg6[%c19, %c0_51] : memref<36x64xf32, #tpu.memory_space<vmem>>, vector<1x64xf32>
      tpu.vector_store %arg6[%c19, %c0_51], %137 {strides = array<i32>} : memref<36x64xf32, #tpu.memory_space<vmem>>, vector<1x64xf32>,
      %c20_i32 = arith.constant 20 : i32
      %139 = arith.addi %18, %c20_i32 : i32
      %140 = arith.index_cast %139 : i32 to index
      %141 = memref.load %arg2[%140] : memref<864xi32, #tpu.memory_space<smem>>
      %142 = arith.index_cast %141 : i32 to index
      %c0_52 = arith.constant 0 : index
      %143 = vector.load %arg4[%142, %c0_52] : memref<50x64xf32, #tpu.memory_space<vmem>>, vector<1x64xf32>
      %c20 = arith.constant 20 : index
      %c0_53 = arith.constant 0 : index
      %144 = vector.load %arg6[%c20, %c0_53] : memref<36x64xf32, #tpu.memory_space<vmem>>, vector<1x64xf32>
      tpu.vector_store %arg6[%c20, %c0_53], %143 {strides = array<i32>} : memref<36x64xf32, #tpu.memory_space<vmem>>, vector<1x64xf32>,
      %c21_i32 = arith.constant 21 : i32
      %145 = arith.addi %18, %c21_i32 : i32
      %146 = arith.index_cast %145 : i32 to index
      %147 = memref.load %arg2[%146] : memref<864xi32, #tpu.memory_space<smem>>
      %148 = arith.index_cast %147 : i32 to index
      %c0_54 = arith.constant 0 : index
      %149 = vector.load %arg4[%148, %c0_54] : memref<50x64xf32, #tpu.memory_space<vmem>>, vector<1x64xf32>
      %c21 = arith.constant 21 : index
      %c0_55 = arith.constant 0 : index
      %150 = vector.load %arg6[%c21, %c0_55] : memref<36x64xf32, #tpu.memory_space<vmem>>, vector<1x64xf32>
      tpu.vector_store %arg6[%c21, %c0_55], %149 {strides = array<i32>} : memref<36x64xf32, #tpu.memory_space<vmem>>, vector<1x64xf32>,
      %c22_i32 = arith.constant 22 : i32
      %151 = arith.addi %18, %c22_i32 : i32
      %152 = arith.index_cast %151 : i32 to index
      %153 = memref.load %arg2[%152] : memref<864xi32, #tpu.memory_space<smem>>
      %154 = arith.index_cast %153 : i32 to index
      %c0_56 = arith.constant 0 : index
      %155 = vector.load %arg4[%154, %c0_56] : memref<50x64xf32, #tpu.memory_space<vmem>>, vector<1x64xf32>
      %c22 = arith.constant 22 : index
      %c0_57 = arith.constant 0 : index
      %156 = vector.load %arg6[%c22, %c0_57] : memref<36x64xf32, #tpu.memory_space<vmem>>, vector<1x64xf32>
      tpu.vector_store %arg6[%c22, %c0_57], %155 {strides = array<i32>} : memref<36x64xf32, #tpu.memory_space<vmem>>, vector<1x64xf32>,
      %c23_i32 = arith.constant 23 : i32
      %157 = arith.addi %18, %c23_i32 : i32
      %158 = arith.index_cast %157 : i32 to index
      %159 = memref.load %arg2[%158] : memref<864xi32, #tpu.memory_space<smem>>
      %160 = arith.index_cast %159 : i32 to index
      %c0_58 = arith.constant 0 : index
      %161 = vector.load %arg4[%160, %c0_58] : memref<50x64xf32, #tpu.memory_space<vmem>>, vector<1x64xf32>
      %c23 = arith.constant 23 : index
      %c0_59 = arith.constant 0 : index
      %162 = vector.load %arg6[%c23, %c0_59] : memref<36x64xf32, #tpu.memory_space<vmem>>, vector<1x64xf32>
      tpu.vector_store %arg6[%c23, %c0_59], %161 {strides = array<i32>} : memref<36x64xf32, #tpu.memory_space<vmem>>, vector<1x64xf32>,
      %c24_i32 = arith.constant 24 : i32
      %163 = arith.addi %18, %c24_i32 : i32
      %164 = arith.index_cast %163 : i32 to index
      %165 = memref.load %arg2[%164] : memref<864xi32, #tpu.memory_space<smem>>
      %166 = arith.index_cast %165 : i32 to index
      %c0_60 = arith.constant 0 : index
      %167 = vector.load %arg4[%166, %c0_60] : memref<50x64xf32, #tpu.memory_space<vmem>>, vector<1x64xf32>
      %c24 = arith.constant 24 : index
      %c0_61 = arith.constant 0 : index
      %168 = vector.load %arg6[%c24, %c0_61] : memref<36x64xf32, #tpu.memory_space<vmem>>, vector<1x64xf32>
      tpu.vector_store %arg6[%c24, %c0_61], %167 {strides = array<i32>} : memref<36x64xf32, #tpu.memory_space<vmem>>, vector<1x64xf32>,
      %c25_i32 = arith.constant 25 : i32
      %169 = arith.addi %18, %c25_i32 : i32
      %170 = arith.index_cast %169 : i32 to index
      %171 = memref.load %arg2[%170] : memref<864xi32, #tpu.memory_space<smem>>
      %172 = arith.index_cast %171 : i32 to index
      %c0_62 = arith.constant 0 : index
      %173 = vector.load %arg4[%172, %c0_62] : memref<50x64xf32, #tpu.memory_space<vmem>>, vector<1x64xf32>
      %c25 = arith.constant 25 : index
      %c0_63 = arith.constant 0 : index
      %174 = vector.load %arg6[%c25, %c0_63] : memref<36x64xf32, #tpu.memory_space<vmem>>, vector<1x64xf32>
      tpu.vector_store %arg6[%c25, %c0_63], %173 {strides = array<i32>} : memref<36x64xf32, #tpu.memory_space<vmem>>, vector<1x64xf32>,
      %c26_i32 = arith.constant 26 : i32
      %175 = arith.addi %18, %c26_i32 : i32
      %176 = arith.index_cast %175 : i32 to index
      %177 = memref.load %arg2[%176] : memref<864xi32, #tpu.memory_space<smem>>
      %178 = arith.index_cast %177 : i32 to index
      %c0_64 = arith.constant 0 : index
      %179 = vector.load %arg4[%178, %c0_64] : memref<50x64xf32, #tpu.memory_space<vmem>>, vector<1x64xf32>
      %c26 = arith.constant 26 : index
      %c0_65 = arith.constant 0 : index
      %180 = vector.load %arg6[%c26, %c0_65] : memref<36x64xf32, #tpu.memory_space<vmem>>, vector<1x64xf32>
      tpu.vector_store %arg6[%c26, %c0_65], %179 {strides = array<i32>} : memref<36x64xf32, #tpu.memory_space<vmem>>, vector<1x64xf32>,
      %c27_i32 = arith.constant 27 : i32
      %181 = arith.addi %18, %c27_i32 : i32
      %182 = arith.index_cast %181 : i32 to index
      %183 = memref.load %arg2[%182] : memref<864xi32, #tpu.memory_space<smem>>
      %184 = arith.index_cast %183 : i32 to index
      %c0_66 = arith.constant 0 : index
      %185 = vector.load %arg4[%184, %c0_66] : memref<50x64xf32, #tpu.memory_space<vmem>>, vector<1x64xf32>
      %c27 = arith.constant 27 : index
      %c0_67 = arith.constant 0 : index
      %186 = vector.load %arg6[%c27, %c0_67] : memref<36x64xf32, #tpu.memory_space<vmem>>, vector<1x64xf32>
      tpu.vector_store %arg6[%c27, %c0_67], %185 {strides = array<i32>} : memref<36x64xf32, #tpu.memory_space<vmem>>, vector<1x64xf32>,
      %c28_i32 = arith.constant 28 : i32
      %187 = arith.addi %18, %c28_i32 : i32
      %188 = arith.index_cast %187 : i32 to index
      %189 = memref.load %arg2[%188] : memref<864xi32, #tpu.memory_space<smem>>
      %190 = arith.index_cast %189 : i32 to index
      %c0_68 = arith.constant 0 : index
      %191 = vector.load %arg4[%190, %c0_68] : memref<50x64xf32, #tpu.memory_space<vmem>>, vector<1x64xf32>
      %c28 = arith.constant 28 : index
      %c0_69 = arith.constant 0 : index
      %192 = vector.load %arg6[%c28, %c0_69] : memref<36x64xf32, #tpu.memory_space<vmem>>, vector<1x64xf32>
      tpu.vector_store %arg6[%c28, %c0_69], %191 {strides = array<i32>} : memref<36x64xf32, #tpu.memory_space<vmem>>, vector<1x64xf32>,
      %c29_i32 = arith.constant 29 : i32
      %193 = arith.addi %18, %c29_i32 : i32
      %194 = arith.index_cast %193 : i32 to index
      %195 = memref.load %arg2[%194] : memref<864xi32, #tpu.memory_space<smem>>
      %196 = arith.index_cast %195 : i32 to index
      %c0_70 = arith.constant 0 : index
      %197 = vector.load %arg4[%196, %c0_70] : memref<50x64xf32, #tpu.memory_space<vmem>>, vector<1x64xf32>
      %c29 = arith.constant 29 : index
      %c0_71 = arith.constant 0 : index
      %198 = vector.load %arg6[%c29, %c0_71] : memref<36x64xf32, #tpu.memory_space<vmem>>, vector<1x64xf32>
      tpu.vector_store %arg6[%c29, %c0_71], %197 {strides = array<i32>} : memref<36x64xf32, #tpu.memory_space<vmem>>, vector<1x64xf32>,
      %c30_i32 = arith.constant 30 : i32
      %199 = arith.addi %18, %c30_i32 : i32
      %200 = arith.index_cast %199 : i32 to index
      %201 = memref.load %arg2[%200] : memref<864xi32, #tpu.memory_space<smem>>
      %202 = arith.index_cast %201 : i32 to index
      %c0_72 = arith.constant 0 : index
      %203 = vector.load %arg4[%202, %c0_72] : memref<50x64xf32, #tpu.memory_space<vmem>>, vector<1x64xf32>
      %c30 = arith.constant 30 : index
      %c0_73 = arith.constant 0 : index
      %204 = vector.load %arg6[%c30, %c0_73] : memref<36x64xf32, #tpu.memory_space<vmem>>, vector<1x64xf32>
      tpu.vector_store %arg6[%c30, %c0_73], %203 {strides = array<i32>} : memref<36x64xf32, #tpu.memory_space<vmem>>, vector<1x64xf32>,
      %c31_i32 = arith.constant 31 : i32
      %205 = arith.addi %18, %c31_i32 : i32
      %206 = arith.index_cast %205 : i32 to index
      %207 = memref.load %arg2[%206] : memref<864xi32, #tpu.memory_space<smem>>
      %208 = arith.index_cast %207 : i32 to index
      %c0_74 = arith.constant 0 : index
      %209 = vector.load %arg4[%208, %c0_74] : memref<50x64xf32, #tpu.memory_space<vmem>>, vector<1x64xf32>
      %c31 = arith.constant 31 : index
      %c0_75 = arith.constant 0 : index
      %210 = vector.load %arg6[%c31, %c0_75] : memref<36x64xf32, #tpu.memory_space<vmem>>, vector<1x64xf32>
      tpu.vector_store %arg6[%c31, %c0_75], %209 {strides = array<i32>} : memref<36x64xf32, #tpu.memory_space<vmem>>, vector<1x64xf32>,
      %c32_i32 = arith.constant 32 : i32
      %211 = arith.addi %18, %c32_i32 : i32
      %212 = arith.index_cast %211 : i32 to index
      %213 = memref.load %arg2[%212] : memref<864xi32, #tpu.memory_space<smem>>
      %214 = arith.index_cast %213 : i32 to index
      %c0_76 = arith.constant 0 : index
      %215 = vector.load %arg4[%214, %c0_76] : memref<50x64xf32, #tpu.memory_space<vmem>>, vector<1x64xf32>
      %c32 = arith.constant 32 : index
      %c0_77 = arith.constant 0 : index
      %216 = vector.load %arg6[%c32, %c0_77] : memref<36x64xf32, #tpu.memory_space<vmem>>, vector<1x64xf32>
      tpu.vector_store %arg6[%c32, %c0_77], %215 {strides = array<i32>} : memref<36x64xf32, #tpu.memory_space<vmem>>, vector<1x64xf32>,
      %c33_i32 = arith.constant 33 : i32
      %217 = arith.addi %18, %c33_i32 : i32
      %218 = arith.index_cast %217 : i32 to index
      %219 = memref.load %arg2[%218] : memref<864xi32, #tpu.memory_space<smem>>
      %220 = arith.index_cast %219 : i32 to index
      %c0_78 = arith.constant 0 : index
      %221 = vector.load %arg4[%220, %c0_78] : memref<50x64xf32, #tpu.memory_space<vmem>>, vector<1x64xf32>
      %c33 = arith.constant 33 : index
      %c0_79 = arith.constant 0 : index
      %222 = vector.load %arg6[%c33, %c0_79] : memref<36x64xf32, #tpu.memory_space<vmem>>, vector<1x64xf32>
      tpu.vector_store %arg6[%c33, %c0_79], %221 {strides = array<i32>} : memref<36x64xf32, #tpu.memory_space<vmem>>, vector<1x64xf32>,
      %c34_i32 = arith.constant 34 : i32
      %223 = arith.addi %18, %c34_i32 : i32
      %224 = arith.index_cast %223 : i32 to index
      %225 = memref.load %arg2[%224] : memref<864xi32, #tpu.memory_space<smem>>
      %226 = arith.index_cast %225 : i32 to index
      %c0_80 = arith.constant 0 : index
      %227 = vector.load %arg4[%226, %c0_80] : memref<50x64xf32, #tpu.memory_space<vmem>>, vector<1x64xf32>
      %c34 = arith.constant 34 : index
      %c0_81 = arith.constant 0 : index
      %228 = vector.load %arg6[%c34, %c0_81] : memref<36x64xf32, #tpu.memory_space<vmem>>, vector<1x64xf32>
      tpu.vector_store %arg6[%c34, %c0_81], %227 {strides = array<i32>} : memref<36x64xf32, #tpu.memory_space<vmem>>, vector<1x64xf32>,
      %c35_i32 = arith.constant 35 : i32
      %229 = arith.addi %18, %c35_i32 : i32
      %230 = arith.index_cast %229 : i32 to index
      %231 = memref.load %arg2[%230] : memref<864xi32, #tpu.memory_space<smem>>
      %232 = arith.index_cast %231 : i32 to index
      %c0_82 = arith.constant 0 : index
      %233 = vector.load %arg4[%232, %c0_82] : memref<50x64xf32, #tpu.memory_space<vmem>>, vector<1x64xf32>
      %c35 = arith.constant 35 : index
      %c0_83 = arith.constant 0 : index
      %234 = vector.load %arg6[%c35, %c0_83] : memref<36x64xf32, #tpu.memory_space<vmem>>, vector<1x64xf32>
      tpu.vector_store %arg6[%c35, %c0_83], %233 {strides = array<i32>} : memref<36x64xf32, #tpu.memory_space<vmem>>, vector<1x64xf32>,
      %c0_84 = arith.constant 0 : index
      %c0_85 = arith.constant 0 : index
      %235 = vector.load %arg6[%c0_84, %c0_85] : memref<36x64xf32, #tpu.memory_space<vmem>>, vector<36x64xf32>
      %236 = vector.broadcast %17 : vector<1x64xf32> to vector<36x64xf32>
      %237 = arith.mulf %235, %236 : vector<36x64xf32>
      %cst_86 = arith.constant dense<0.000000e+00> : vector<36xf32>
      %238 = vector.multi_reduction <add>, %237, %cst_86 [1] : vector<36x64xf32> to vector<36xf32>
      %239 = vector.shape_cast %238 : vector<36xf32> to vector<36x1xf32>
      %240 = arith.mulf %239, %5 : vector<36x1xf32>
      %cst_87 = arith.constant 0.000000e+00 : f32
      %241 = vector.broadcast %cst_87 : f32 to vector<36x1xf32>
      %242 = arith.minimumf %240, %241 : vector<36x1xf32>
      %243 = math.absf %240 : vector<36x1xf32>
      %cst_88 = arith.constant 0.000000e+00 : f32
      %244 = vector.broadcast %cst_88 : f32 to vector<36x1xf32>
      %245 = arith.subf %244, %243 : vector<36x1xf32>
      %246 = math.exp %245 : vector<36x1xf32>
      %247 = math.log1p %246 : vector<36x1xf32>
      %248 = arith.subf %242, %247 : vector<36x1xf32>
      %249 = vector.shape_cast %248 : vector<36x1xf32> to vector<1x36x1xf32>
      %cst_89 = arith.constant dense<0.000000e+00> : vector<1xf32>
      %250 = vector.multi_reduction <add>, %249, %cst_89 [1, 2] : vector<1x36x1xf32> to vector<1xf32>
      %251 = vector.shape_cast %250 : vector<1xf32> to vector<1x1x1xf32>
      %252 = vector.extract %251[0, 0, 0] : f32 from vector<1x1x1xf32>
      %cst_90 = arith.constant 0.000000e+00 : f32
      %253 = arith.subf %cst_90, %252 : f32
      %254 = vector.broadcast %arg7 : i32 to vector<1x8xi32>
      %255 = arith.cmpi eq, %6, %254 : vector<1x8xi32>
      %256 = vector.broadcast %253 : f32 to vector<1x8xf32>
      %257 = arith.select %255, %256, %arg8 : vector<1x8xi1>, vector<1x8xf32>
      scf.yield %257 : vector<1x8xf32>
    }
    %c8_i32_2 = arith.constant 8 : i32
    %10 = vector.shape_cast %9 : vector<1x8xf32> to vector<1x1x8xf32>
    %c0 = arith.constant 0 : index
    %c0_3 = arith.constant 0 : index
    %c0_4 = arith.constant 0 : index
    %11 = vector.load %arg5[%c0, %c0_3, %c0_4] : memref<1x1x8xf32, #tpu.memory_space<vmem>>, vector<1x1x8xf32>
    tpu.vector_store %arg5[%c0, %c0_3, %c0_4], %10 {strides = array<i32>} : memref<1x1x8xf32, #tpu.memory_space<vmem>>, vector<1x1x8xf32>,
    return
  }
  func.func @transform_0(%arg0: i32, %arg1: memref<24xi32, #tpu.memory_space<smem>>, %arg2: memref<864xi32, #tpu.memory_space<smem>>) -> (i32, i32) {
    %c0_i32 = arith.constant 0 : i32
    %c0_i32_0 = arith.constant 0 : i32
    %c0_i32_1 = arith.constant 0 : i32
    return %c0_i32, %c0_i32_0 : i32, i32
  }
  func.func @transform_1(%arg0: i32, %arg1: memref<24xi32, #tpu.memory_space<smem>>, %arg2: memref<864xi32, #tpu.memory_space<smem>>) -> (i32, i32) {
    %c0_i32 = arith.constant 0 : i32
    %c0_i32_0 = arith.constant 0 : i32
    %c0_i32_1 = arith.constant 0 : i32
    return %c0_i32, %c0_i32_0 : i32, i32
  }
  func.func @transform_2(%arg0: i32, %arg1: memref<24xi32, #tpu.memory_space<smem>>, %arg2: memref<864xi32, #tpu.memory_space<smem>>) -> (i32, i32, i32) {
    %c0_i32 = arith.constant 0 : i32
    %c0_i32_0 = arith.constant 0 : i32
    %c0_i32_1 = arith.constant 0 : i32
    return %arg0, %c0_i32, %c0_i32_0 : i32, i32, i32
  }
}

</mosaic_0001>

<bundles_post_ra>
// kernel: tpu_custom_call.1
= control target key start
LH: loop header
LB: loop body
LE: loop exit
PB: predicated region body
PF: predicated region fallthrough
CT: control target
= control target key end

     0   :  { %s902_s15 = smov [#allocation4]   ;;  %s903_s18 = smov [#allocation5]   ;;  %s1212_s0 = inlined_call_operand.hbm [shape: s32[24], index: 0, kind: input, shape index: {}]   ;;  %s1213_s2 = inlined_call_operand.hbm [shape: f32[50,64], index: 2, kind: input, shape index: {}]   ;;  %s1214_s3 = inlined_call_operand.hbm [shape: f32[50,64], index: 3, kind: input, shape index: {}]   ;;  %s1215_s4 = inlined_call_operand.hbm [shape: f32[3,1,8], index: 4, kind: output, shape index: {}]   ;;  %s1216_s1 = inlined_call_operand.hbm [shape: s32[864], index: 1, kind: input, shape index: {}]  }
   0x1   :  { %1219 = sst [smem:[#allocation16_spill]] %s1213_s2 }
   0x2   :  { %10 = dma.hbm_to_smem %s1212_s0, 16, %s902_s15, [#allocation3] }
   0x3   :  { %12 = dma.hbm_to_smem %s1216_s1, 112, %s903_s18, [#allocation3] }
   0x4   :  { %864 = dma.done.wait [#allocation3], 128 }
   0x5   :  { %865 = vsyncadd [#allocation3], 4294967168 }
   0x6   :  { %14 = sfence }
   0x7   :  { %15 = vsyncpa [#allocation7], 0 }
   0x8   :  { %16 = vsyncpa [#allocation10], 0 }
   0x9   :  { %17 = vsyncpa [#allocation8], 0 }
   0xa   :  { %19 = vsyncpa [#allocation8 + $0x1], 0  ;;  %s941_s21 = smov 0   ;;  %s943_s22 = smov 0  }
   0xb   :  { %s945_s23 = smov 0   ;;  %s947_s24 = smov 0  }
   0xc LB: > { %s962_s0 = sadd.s32 4294967295, %s892_s24   ;;  %s631_s1 = sadd.s32 4294967294, %s892_s24   ;;  %s892_s24 = sphi %s947_s24, %s1235_s24   ;;  %s888_s23 = sphi %s945_s23, %s1234_s23   ;;  %s884_s22 = sphi %s943_s22, %s1233_s22   ;;  %s880_s21 = sphi %s941_s21, %s1232_s21  }
   0xd   : > { %s966_s25 = sadd.s32 1, %s892_s24   ;;  %s74_s26 = sadd.s32 1, %s888_s23 }
   0xe   : > { %s71_s27 = ssub.s32 %s892_s24, %s966_s25  ;;  %p84_p0 = scmp.ne.s32.totalorder %s888_s23, %s884_s22 }
   0xf   : > { %p72_p1 = scmp.eq.s32.totalorder %s71_s27, 0  ;;  %p85_p2 = scmp.eq.s32.totalorder %s962_s0, 2 }
  0x10   : > { %p90_p3 = scmp.ne.s32.totalorder %s884_s22, %s880_s21  ;;  %p91_p4 = scmp.eq.s32.totalorder %s631_s1, 2 }
  0x11   : > { %s977_s28 = scalar_select %p72_p1, %s888_s23, %s74_s26  }
  0x12   : > { %p979_p5 = por %p85_p2, %p84_p0  ;;  %p983_p6 = por %p91_p4, %p90_p3 }
  0x13   : > { %p632_p7 = scmp.ge.s32.totalorder %s892_s24, 1  ;;  %p98_p8 = scmp.lt.s32.totalorder %s892_s24, 4 }
  0x14   : > { %s1221_s30 = scalar_select %p983_p6, 1, 0 }
  0x15   : > { %p1217_p9 = scmp.eq.s32.totalorder %s962_s0, 0  ;;  %p990_p10 = pnand %p632_p7, %p98_p8 }
  0x16   : > { %s904_s6 = smov [#allocation6]   ;;  %s905_s9 = smov [#allocation9]  }
  0x17   : > { %s110_s7 = sshll.u32 %s904_s6, 4  ;;  %p655_p11 = pneg %p990_p10  ;;  %s111_s7 = int_to_ptr.vmem [resolvable:$true] %s110_s7 }
  0x18   : > { %s123_s10 = sshll.u32 %s905_s9, 4  ;;  %s773_s11 = scalar_lea.vmem %s111_s7, 896  ;;  %s124_s10 = int_to_ptr.vmem [resolvable:$true] %s123_s10 }
  0x19   : > { %p998_p12 = pnand %p1217_p9, %p655_p11  ;;  %p774_p0 = scmp.ne.s32.totalorder %s111_s7, %s773_s11 }
  0x1a   : > { %p781_p3 = scmp.lt.s32.totalorder %s111_s7, %s111_s7  ;;  %p782_p4 = scmp.lt.s32.totalorder %s773_s11, %s773_s11 }
  0x1b   : > { %p764_p13 = pneg %p998_p12 }
  0x1c   : > { %p783_p7 = por %p782_p4, %p781_p3 }
  0x1d   : > { %p776_p1 = pnand %p774_p0, %p764_p13 }
  0x1f   : > { %p777_p2 = pneg %p776_p1 }
  0x21   : > { %p784_p8 = pnand %p783_p7, %p777_p2 }
  0x23   : > { %787 = shalt.err (!%p784_p8)
}
  0x24   : > { %s906_s12 = smov 128   ;;  %s907_s13 = smov 8  }
  0x25   : > { %s1224_s2 = sld [smem:[#allocation16_spill]]  ;;  %s799_s16 = scalar_lea.vmem %s124_s10, 896 }
  0x26   : > { %p800_p11 = scmp.ne.s32.totalorder %s124_s10, %s799_s16  ;;  %p807_p9 = scmp.lt.s32.totalorder %s124_s10, %s124_s10 }
  0x27   : > { %p808_p6 = scmp.lt.s32.totalorder %s799_s16, %s799_s16 }
  0x28   : > { %p802_p0 = pnand %p800_p11, %p764_p13 }
  0x29   : > { %p809_p3 = por %p808_p6, %p807_p9 }
  0x2a   : > { %p803_p1 = pneg %p802_p0 }
  0x2b   : > { %658 = dma.hbm_to_vmem [thread:$0]  (!%p998_p12), %s1224_s2, 896, %s111_s7, [#allocation7], %s906_s12, %s906_s12, %s907_s13  }
  0x2c   : > { %p810_p2 = pnand %p809_p3, %p803_p1 }
  0x2e   : > { %813 = shalt.err (!%p810_p2)
}
  0x2f   : > { %661 = dma.hbm_to_vmem [thread:$0]  (!%p998_p12), %s1214_s3, 896, %s124_s10, [#allocation10], %s906_s12, %s906_s12, %s907_s13  }
  0x30   : > { %139 = sbr.rel (%p990_p10) target bundleno = 539 (0x21b), region = 28  ;;  %p1225_p4 = scmp.eq.s32.totalorder (!%p990_p10), %s962_s0, 0 }
  0x35   : > { %867 = dma.done.wait (%p1225_p4), [#allocation7], 896   ;;  %p1226_p13 = pmov %p1225_p4 }
  0x36   : > { %p1227_p7 = pmov %p1225_p4 }
  0x37   : > { %869 = vsyncadd (%p1226_p13), [#allocation7], 4294966400 }
  0x38   : > { %871 = dma.done.wait (%p1227_p7), [#allocation10], 896   ;;  %p1228_p6 = pmov %p1225_p4 }
  0x39   : > { %s1218_s19 = sand.u32 1, %s884_s22   ;;  %v159_v0 = vlaneseq  ;;  %v908_v3 = vmov -1.0   ;;  %v1039_v5 = vmov 0.0   ;;  %s1041_s1 = smov 0  }
  0x3a   : > { %873 = vsyncadd (%p1228_p6), [#allocation10], 4294966400  ;;  %s1037_s20 = scalar_lea.vmem [#allocation11], %s1218_s19 }
  0x3b   : > { %v160_v1 = vshrl.u32 %v159_v0, 7  ;;  %v1031_v2 = vand.u32 127, %v159_v0 }
  0x3d   : > { %vm165_vm0 = vcmp.lt.s32.totalorder %v160_v1, 6 }
  0x3e   : > { %v1033_v4 = vsel %vm165_vm0, 1.0, %v908_v3 }
  0x3f LB: >> { %s638_s26 = sshll.u32 %s962_s0, 3  ;;  %vm193_vm1 = vcmask 516096   ;;  %vm384_vm2 = vcmask 523264   ;;  %vm397_vm3 = vcmask 519168   ;;  %vm481_vm8 = vcmask 7168   ;;  %s900_s1 = sphi %s1041_s1, %s182_s1   ;;  %v896_v5 = vphi %v1039_v5, %v1229_v5  }
  0x40   : >> { %s185_s27 = sadd.s32 %s900_s1, %s638_s26  ;;  %vm489_vm10 = vcmask 3072  }
  0x41   : >> { %s1051_s5 = sld [smem:[#allocation4 + %s185_s27]]  ;;  %s1053_s6 = smul.u32 36, %s185_s27 }
  0x43   : >> { %s270_s7 = sadd.s32 16, %s1053_s6  ;;  %s275_s8 = sadd.s32 17, %s1053_s6 }
  0x44   : >> { %s271_s9 = sld [smem:[#allocation5 + %s270_s7]]  ;;  %s280_s10 = sadd.s32 18, %s1053_s6 }
  0x45   : >> { %s276_s11 = sld [smem:[#allocation5 + %s275_s8]]  ;;  %s285_s12 = sadd.s32 19, %s1053_s6 }
  0x46   : >> { %s281_s13 = sld [smem:[#allocation5 + %s280_s10]]  ;;  %s290_s14 = sadd.s32 20, %s1053_s6 }
  0x47   : >> { %s286_s15 = sld [smem:[#allocation5 + %s285_s12]]  ;;  %s295_s17 = sadd.s32 21, %s1053_s6 }
  0x48   : >> { %s291_s16 = sld [smem:[#allocation5 + %s290_s14]]  ;;  %s300_s26 = sadd.s32 22, %s1053_s6 }
  0x49   : >> { %s296_s18 = sld [smem:[#allocation5 + %s295_s17]]  ;;  %s305_s2 = sadd.s32 23, %s1053_s6 }
  0x4a   : >> { %s301_s27 = sld [smem:[#allocation5 + %s300_s26]]  ;;  %s272_s19 = scalar_lea.vmem [#allocation9], %s271_s9 }
  0x4b   : >> { %v273_v6 = vld [vmem:[%s272_s19] sm:$0x1]  ;;  %s277_s7 = scalar_lea.vmem [#allocation9], %s276_s11  ;;  %s306_s8 = sld [smem:[#allocation5 + %s305_s2]] }
  0x4c   : >> { %274 = vst.msk [vmem:[#allocation2 + $0x10] sm:$0x1] %vm193_vm1, %v273_v6  ;;  %v278_v7 = vld [vmem:[%s277_s7] sm:$0x1]  ;;  %s282_s10 = scalar_lea.vmem [#allocation9], %s281_s13  ;;  %s190_s12 = sld [smem:[#allocation5 + %s1053_s6]] }
  0x4d   : >> { %279 = vst.msk [vmem:[#allocation2 + $0x11] sm:$0x1] %vm193_vm1, %v278_v7  ;;  %v283_v8 = vld [vmem:[%s282_s10] sm:$0x1]  ;;  %s287_s14 = scalar_lea.vmem [#allocation9], %s286_s15  ;;  %s195_s17 = sadd.s32 1, %s1053_s6 }
  0x4e   : >> { %284 = vst.msk [vmem:[#allocation2 + $0x12] sm:$0x1] %vm193_vm1, %v283_v8  ;;  %v288_v9 = vld [vmem:[%s287_s14] sm:$0x1]  ;;  %s292_s19 = scalar_lea.vmem [#allocation9], %s291_s16  ;;  %s196_s9 = sld [smem:[#allocation5 + %s195_s17]] }
  0x4f   : >> { %289 = vst.msk [vmem:[#allocation2 + $0x13] sm:$0x1] %vm193_vm1, %v288_v9  ;;  %v293_v10 = vld [vmem:[%s292_s19] sm:$0x1]  ;;  %s297_s2 = scalar_lea.vmem [#allocation9], %s296_s18  ;;  %s200_s11 = sadd.s32 2, %s1053_s6 }
  0x50   : >> { %294 = vst.msk [vmem:[#allocation2 + $0x14] sm:$0x1] %vm193_vm1, %v293_v10  ;;  %v298_v11 = vld [vmem:[%s297_s2] sm:$0x1]  ;;  %s302_s13 = scalar_lea.vmem [#allocation9], %s301_s27  ;;  %s201_s26 = sld [smem:[#allocation5 + %s200_s11]] }
  0x51   : >> { %299 = vst.msk [vmem:[#allocation2 + $0x15] sm:$0x1] %vm193_vm1, %v298_v11  ;;  %v303_v12 = vld [vmem:[%s302_s13] sm:$0x1]  ;;  %s205_s15 = sadd.s32 3, %s1053_s6  ;;  %s307_s7 = scalar_lea.vmem [#allocation9], %s306_s8 }
  0x52   : >> { %304 = vst.msk [vmem:[#allocation2 + $0x16] sm:$0x1] %vm193_vm1, %v303_v12  ;;  %s206_s16 = sld [smem:[#allocation5 + %s205_s15]]  ;;  %v308_v13 = vld [vmem:[%s307_s7] sm:$0x1]  ;;  %s210_s10 = sadd.s32 4, %s1053_s6 }
  0x53   : >> { %309 = vst.msk [vmem:[#allocation2 + $0x17] sm:$0x1] %vm193_vm1, %v308_v13  ;;  %s191_s18 = scalar_lea.vmem [#allocation9], %s190_s12  ;;  %s211_s14 = sld [smem:[#allocation5 + %s210_s10]] }
  0x54   : >> { %v192_v14 = vld [vmem:[%s191_s18] sm:$0x1]  ;;  %s215_s17 = sadd.s32 5, %s1053_s6  ;;  %s197_s19 = scalar_lea.vmem [#allocation9], %s196_s9 }
  0x55   : >> { %194 = vst.msk [vmem:[#allocation2] sm:$0x1] %vm193_vm1, %v192_v14  ;;  %s216_s27 = sld [smem:[#allocation5 + %s215_s17]]  ;;  %v198_v15 = vld [vmem:[%s197_s19] sm:$0x1]  ;;  %s220_s2 = sadd.s32 6, %s1053_s6 }
  0x56   : >> { %s225_s11 = sadd.s32 7, %s1053_s6  ;;  %199 = vst.msk [vmem:[#allocation2 + $0x1] sm:$0x1] %vm193_vm1, %v198_v15  ;;  %s221_s8 = sld [smem:[#allocation5 + %s220_s2]] }
  0x57   : >> { %s202_s13 = scalar_lea.vmem [#allocation9], %s201_s26  ;;  %s1081_s15 = sld [smem:[#allocation5 + %s225_s11]] }
  0x58   : >> { %v203_v16 = vld [vmem:[%s202_s13] sm:$0x1]  ;;  %s187_s12 = scalar_lea.vmem [#allocation6], %s1051_s5  ;;  %s207_s7 = scalar_lea.vmem [#allocation9], %s206_s16 }
  0x59   : >> { %v1084_v17 = vld [vmem:[%s187_s12] ss:$0 sm:$0xff]  ;;  %204 = vst.msk [vmem:[#allocation2 + $0x2] sm:$0x1] %vm193_vm1, %v203_v16  ;;  %s310_s9 = sadd.s32 24, %s1053_s6  ;;  %s315_s10 = sadd.s32 25, %s1053_s6 }
  0x5a   : >> { %v208_v18 = vld [vmem:[%s207_s7] sm:$0x1]  ;;  %s311_s18 = sld [smem:[#allocation5 + %s310_s9]]  ;;  %v372_v19 = vld [vmem:[#allocation2 + $0x10] sm:$0xff]  ;;  %s212_s26 = scalar_lea.vmem [#allocation9], %s211_s14 }
  0x5b   : >> { %209 = vst.msk [vmem:[#allocation2 + $0x3] sm:$0x1] %vm193_vm1, %v208_v18  ;;  %v213_v20 = vld [vmem:[%s212_s26] sm:$0x1]  ;;  %s316_s17 = sld [smem:[#allocation5 + %s315_s10]]  ;;  %v381_v21 = vmul.f32 %v1084_v17, %v372_v19  ;;  %s217_s5 = scalar_lea.vmem [#allocation9], %s216_s27 }
  0x5c   : >> { %214 = vst.msk [vmem:[#allocation2 + $0x4] sm:$0x1] %vm193_vm1, %v213_v20  ;;  %v218_v22 = vld [vmem:[%s217_s5] sm:$0x1]  ;;  %s320_s16 = sadd.s32 26, %s1053_s6  ;;  %s325_s19 = sadd.s32 27, %s1053_s6 }
  0x5d   : >> { %219 = vst.msk [vmem:[#allocation2 + $0x5] sm:$0x1] %vm193_vm1, %v218_v22  ;;  %s321_s2 = sld [smem:[#allocation5 + %s320_s16]]  ;;  %v391_v23 = vsel %vm384_vm2, %v381_v21, 0.0  ;;  %s222_s11 = scalar_lea.vmem [#allocation9], %s221_s8 }
  0x5e   : >> { %v223_v24 = vld [vmem:[%s222_s11] sm:$0x1]  ;;  %s326_s14 = sld [smem:[#allocation5 + %s325_s19]]  ;;  %392 = vadd.xlane.f32.xlu1 %v391_v23  ;;  %s227_s13 = scalar_lea.vmem [#allocation9], %s1081_s15 }
  0x5f   : >> { %224 = vst.msk [vmem:[#allocation2 + $0x6] sm:$0x1] %vm193_vm1, %v223_v24  ;;  %v228_v25 = vld [vmem:[%s227_s13] sm:$0x1]  ;;  %s330_s12 = sadd.s32 28, %s1053_s6  ;;  %s335_s27 = sadd.s32 29, %s1053_s6 }
  0x60   : >> { %229 = vst.msk [vmem:[#allocation2 + $0x7] sm:$0x1] %vm193_vm1, %v228_v25  ;;  %s331_s7 = sld [smem:[#allocation5 + %s330_s12]]  ;;  %s312_s9 = scalar_lea.vmem [#allocation9], %s311_s18 }
  0x61   : >> { %v313_v26 = vld [vmem:[%s312_s9] sm:$0x1]  ;;  %s336_s10 = sld [smem:[#allocation5 + %s335_s27]]  ;;  %s317_s8 = scalar_lea.vmem [#allocation9], %s316_s17 }
  0x62   : >> { %314 = vst.msk [vmem:[#allocation2 + $0x18] sm:$0x1] %vm193_vm1, %v313_v26  ;;  %v318_v27 = vld [vmem:[%s317_s8] sm:$0x1]  ;;  %s340_s26 = sadd.s32 30, %s1053_s6  ;;  %s345_s5 = sadd.s32 31, %s1053_s6 }
  0x63   : >> { %319 = vst.msk [vmem:[#allocation2 + $0x19] sm:$0x1] %vm193_vm1, %v318_v27  ;;  %s341_s15 = sld [smem:[#allocation5 + %s340_s26]]  ;;  %s322_s16 = scalar_lea.vmem [#allocation9], %s321_s2 }
  0x64   : >> { %v323_v28 = vld [vmem:[%s322_s16] sm:$0x1]  ;;  %s346_s19 = sld [smem:[#allocation5 + %s345_s5]]  ;;  %s327_s18 = scalar_lea.vmem [#allocation9], %s326_s14 }
  0x65   : >> { %324 = vst.msk [vmem:[#allocation2 + $0x1a] sm:$0x1] %vm193_vm1, %v323_v28  ;;  %v328_v29 = vld [vmem:[%s327_s18] sm:$0x1]  ;;  %s230_s11 = sadd.s32 8, %s1053_s6  ;;  %s235_s13 = sadd.s32 9, %s1053_s6 }
  0x66   : >> { %329 = vst.msk [vmem:[#allocation2 + $0x1b] sm:$0x1] %vm193_vm1, %v328_v29  ;;  %s231_s17 = sld [smem:[#allocation5 + %s230_s11]]  ;;  %s332_s12 = scalar_lea.vmem [#allocation9], %s331_s7 }
  0x67   : >> { %v370_v30 = vld [vmem:[#allocation2] sm:$0xff]  ;;  %s236_s27 = sld [smem:[#allocation5 + %s235_s13]]  ;;  %s337_s2 = scalar_lea.vmem [#allocation9], %s336_s10 }
  0x68   : >> { %v333_v31 = vld [vmem:[%s332_s12] sm:$0x1]  ;;  %v379_v32 = vmul.f32 %v1084_v17, %v370_v30  ;;  %s240_s9 = sadd.s32 10, %s1053_s6  ;;  %s245_s14 = sadd.s32 11, %s1053_s6 }
  0x69   : >> { %334 = vst.msk [vmem:[#allocation2 + $0x1c] sm:$0x1] %vm193_vm1, %v333_v31  ;;  %v338_v33 = vld [vmem:[%s337_s2] sm:$0x1]  ;;  %s241_s8 = sld [smem:[#allocation5 + %s240_s9]]  ;;  %s342_s26 = scalar_lea.vmem [#allocation9], %s341_s15 }
  0x6a   : >> { %339 = vst.msk [vmem:[#allocation2 + $0x1d] sm:$0x1] %vm193_vm1, %v338_v33  ;;  %v385_v34 = vsel %vm384_vm2, %v379_v32, 0.0  ;;  %v343_v35 = vld [vmem:[%s342_s26] sm:$0x1]  ;;  %s246_s7 = sld [smem:[#allocation5 + %s245_s14]] }
  0x6b   : >> { %386 = vadd.xlane.f32.xlu0 %v385_v34  ;;  %344 = vst.msk [vmem:[#allocation2 + $0x1e] sm:$0x1] %vm193_vm1, %v343_v35  ;;  %s347_s5 = scalar_lea.vmem [#allocation9], %s346_s19  ;;  %s250_s16 = sadd.s32 12, %s1053_s6 }
  0x6c   : >> { %v348_v36 = vld [vmem:[%s347_s5] sm:$0x1]  ;;  %s255_s10 = sadd.s32 13, %s1053_s6  ;;  %s251_s18 = sld [smem:[#allocation5 + %s250_s16]] }
  0x6d   : >> { %349 = vst.msk [vmem:[#allocation2 + $0x1f] sm:$0x1] %vm193_vm1, %v348_v36  ;;  %s232_s11 = scalar_lea.vmem [#allocation9], %s231_s17  ;;  %s256_s13 = sld [smem:[#allocation5 + %s255_s10]] }
  0x6e   : >> { %v233_v37 = vld [vmem:[%s232_s11] sm:$0x1]  ;;  %s237_s15 = scalar_lea.vmem [#allocation9], %s236_s27  ;;  %s260_s12 = sadd.s32 14, %s1053_s6 }
  0x6f   : >> { %234 = vst.msk [vmem:[#allocation2 + $0x8] sm:$0x1] %vm193_vm1, %v233_v37  ;;  %v238_v38 = vld [vmem:[%s237_s15] sm:$0x1]  ;;  %s265_s2 = sadd.s32 15, %s1053_s6  ;;  %s261_s19 = sld [smem:[#allocation5 + %s260_s12]] }
  0x70   : >> { %239 = vst.msk [vmem:[#allocation2 + $0x9] sm:$0x1] %vm193_vm1, %v238_v38  ;;  %s242_s9 = scalar_lea.vmem [#allocation9], %s241_s8  ;;  %s266_s14 = sld [smem:[#allocation5 + %s265_s2]] }
  0x71   : >> { %v243_v39 = vld [vmem:[%s242_s9] sm:$0x1]  ;;  %s247_s17 = scalar_lea.vmem [#allocation9], %s246_s7  ;;  %s350_s26 = sadd.s32 32, %s1053_s6 }
  0x72   : >> { %244 = vst.msk [vmem:[#allocation2 + $0xa] sm:$0x1] %vm193_vm1, %v243_v39  ;;  %v248_v40 = vld [vmem:[%s247_s17] sm:$0x1]  ;;  %s355_s5 = sadd.s32 33, %s1053_s6  ;;  %s351_s27 = sld [smem:[#allocation5 + %s350_s26]] }
  0x73   : >> { %249 = vst.msk [vmem:[#allocation2 + $0xb] sm:$0x1] %vm193_vm1, %v248_v40  ;;  %s252_s16 = scalar_lea.vmem [#allocation9], %s251_s18  ;;  %s356_s10 = sld [smem:[#allocation5 + %s355_s5]] }
  0x74   : >> { %v373_v41 = vld [vmem:[#allocation2 + $0x18] sm:$0xff]  ;;  %v253_v42 = vld [vmem:[%s252_s16] sm:$0x1]  ;;  %s257_s8 = scalar_lea.vmem [#allocation9], %s256_s13  ;;  %s360_s11 = sadd.s32 34, %s1053_s6 }
  0x75   : >> { %v382_v43 = vmul.f32 %v1084_v17, %v373_v41  ;;  %254 = vst.msk [vmem:[#allocation2 + $0xc] sm:$0x1] %vm193_vm1, %v253_v42  ;;  %v258_v44 = vld [vmem:[%s257_s8] sm:$0x1]  ;;  %s365_s15 = sadd.s32 35, %s1053_s6  ;;  %s361_s7 = sld [smem:[#allocation5 + %s360_s11]] }
  0x76   : >> { %259 = vst.msk [vmem:[#allocation2 + $0xd] sm:$0x1] %vm193_vm1, %v258_v44  ;;  %s262_s12 = scalar_lea.vmem [#allocation9], %s261_s19  ;;  %s366_s2 = sld [smem:[#allocation5 + %s365_s15]] }
  0x77   : >> { %v394_v45 = vsel %vm384_vm2, %v382_v43, 0.0  ;;  %v263_v46 = vld [vmem:[%s262_s12] sm:$0x1]  ;;  %s267_s18 = scalar_lea.vmem [#allocation9], %s266_s14 }
  0x78   : >> { %395 = vadd.xlane.f32.xlu1 %v394_v45  ;;  %264 = vst.msk [vmem:[#allocation2 + $0xe] sm:$0x1] %vm193_vm1, %v263_v46  ;;  %v268_v47 = vld [vmem:[%s267_s18] sm:$0x1]  ;;  %s352_s9 = scalar_lea.vmem [#allocation9], %s351_s27 }
  0x79   : >> { %269 = vst.msk [vmem:[#allocation2 + $0xf] sm:$0x1] %vm193_vm1, %v268_v47  ;;  %v353_v48 = vld [vmem:[%s352_s9] sm:$0x1]  ;;  %s357_s6 = scalar_lea.vmem [#allocation9], %s356_s10 }
  0x7a   : >> { %354 = vst.msk [vmem:[#allocation2 + $0x20] sm:$0x1] %vm193_vm1, %v353_v48  ;;  %v358_v49 = vld [vmem:[%s357_s6] sm:$0x1] }
  0x7b   : >> { %359 = vst.msk [vmem:[#allocation2 + $0x21] sm:$0x1] %vm193_vm1, %v358_v49  ;;  %s362_s13 = scalar_lea.vmem [#allocation9], %s361_s7 }
  0x7c   : >> { %v363_v50 = vld [vmem:[%s362_s13] sm:$0x1]  ;;  %s367_s19 = scalar_lea.vmem [#allocation9], %s366_s2 }
  0x7d   : >> { %364 = vst.msk [vmem:[#allocation2 + $0x22] sm:$0x1] %vm193_vm1, %v363_v50  ;;  %v368_v51 = vld [vmem:[%s367_s19] sm:$0x1] }
  0x7e   : >> { %369 = vst.msk [vmem:[#allocation2 + $0x23] sm:$0x1] %vm193_vm1, %v368_v51 }
  0x80   : >> { %v371_v52 = vld [vmem:[#allocation2 + $0x8] sm:$0xff] }
  0x81   : >> { %v380_v53 = vmul.f32 %v1084_v17, %v371_v52 }
  0x83   : >> { %v388_v54 = vsel %vm384_vm2, %v380_v53, 0.0 }
  0x84   : >> { %389 = vadd.xlane.f32.xlu0 %v388_v54 }
  0x85   : >> { %v374_v55 = vld [vmem:[#allocation2 + $0x20] sm:$0xf] }
  0x86   : >> { %v383_v56 = vmul.f32 %v1084_v17, %v374_v55 }
  0x88   : >> { %v398_v57 = vsel %vm397_vm3, %v383_v56, 0.0 }
  0x89   : >> { %399 = vadd.xlane.f32.xlu0 %v398_v57 }
  0xe7   : >> { %v393_v59 = vpop.xlane.xlu1 %392 }
  0xe8   : >> { %v1145_v61 = vmul.f32 -1.0, %v393_v59 }
  0xea   : >> { %v413_v63 = vand.u32 2147483647, %v1145_v61  ;;  %v408_v55 = vmin.f32 %v1145_v61, 0.0 }
  0xec   : >> { %v418_v6 = vsub.f32 0.0, %v413_v63 }
  0xee   : >> { %v425_v10 = vmul.f32 1.442695, %v418_v6 }
  0xf4   : >> { %v387_v58 = vpop.xlane.xlu0 %386 }
  0xf5   : >> { %v1143_v60 = vmul.f32 %v387_v58, %v1033_v4 }
  0xf7   : >> { %v411_v62 = vand.u32 2147483647, %v1143_v60  ;;  %v406_v56 = vmin.f32 %v1143_v60, 0.0 }
  0xf9   : >> { %v416_v1 = vsub.f32 0.0, %v411_v62 }
  0xfb   : >> { %v421_v8 = vmul.f32 1.442695, %v416_v1 }
  0xfd   : >> { %726 = vpow2.f32 %v421_v8 }
  0xfe   : >> { %728 = vpow2.f32 %v425_v10 }
 0x101   : >> { %v396_v0 = vpop.xlane.xlu1 %395 }
 0x102   : >> { %v1149_v3 = vmul.f32 -1.0, %v396_v0 }
 0x104   : >> { %v414_v7 = vand.u32 2147483647, %v1149_v3 }
 0x106   : >> { %v419_v9 = vsub.f32 0.0, %v414_v7 }
 0x108   : >> { %v427_v11 = vmul.f32 1.442695, %v419_v9  ;;  %v409_v9 = vmin.f32 %v1149_v3, 0.0 }
 0x10a   : >> { %730 = vpow2.f32 %v427_v11  ;;  %v727_v20 = vpop.eup %726 }
 0x10b   : >> { %v729_v22 = vpop.eup %728  ;;  %v431_v23 = vadd.f32 1.0, %v727_v20  ;;  %v434_v30 = vmul.f32 -0.5, %v727_v20  ;;  %v437_v39 = vand.u32 2147483647, %v727_v20 }
 0x10c   : >> { %v449_v26 = vadd.f32 1.0, %v729_v22  ;;  %v452_v32 = vmul.f32 -0.5, %v729_v22  ;;  %v455_v43 = vand.u32 2147483647, %v729_v22 }
 0x10d   : >> { %v390_v12 = vpop.xlane.xlu0 %389  ;;  %v435_v35 = vadd.f32 1.0, %v434_v30  ;;  %vm438_vm4 = vcmp.lt.f32.partialorder %v437_v39, 0.0004427343 }
 0x10e   : >> { %v1152_v13 = vmul.f32 -1.0, %v390_v12  ;;  %v453_v40 = vadd.f32 1.0, %v452_v32  ;;  %vm456_vm5 = vcmp.lt.f32.partialorder %v455_v43, 0.0004427343  ;;  %v502_v32 = vstv %s900_s1  ;;  %s182_s1 = sadd.s32 1, %s900_s1  }
 0x10f   : >> { %v436_v45 = vmul.f32 %v727_v20, %v435_v35  ;;  %vm503_vm11 = vcmp.eq.s32.totalorder %v1031_v2, %v502_v32  ;;  %p179_p9 = scmp.ge.s32.totalorder %s182_s1, 8  }
 0x110   : >> { %v412_v14 = vand.u32 2147483647, %v1152_v13  ;;  %v454_v50 = vmul.f32 %v729_v22, %v453_v40  ;;  %v407_v0 = vmin.f32 %v1152_v13, 0.0  ;;  %vm506_vm12 = vcmask (%p179_p9), 57344   ;;  %s640_s26 = sshll.u32 (%p179_p9), %s962_s0, 4  ;;  %s521_s10 = sshll.u32 (%p179_p9), %s1037_s20, 4  ;;  %s522_s10 = int_to_ptr.vmem [resolvable:$true] %s521_s10 }
 0x111   : > { %s519_s16 = scalar_lea.hbm (%p179_p9), %s1215_s4, %s640_s26  ;;  %s1230_s8 = sand.u32 (%p179_p9), 1, %s884_s22  }
 0x112   : >> { %v417_v15 = vsub.f32 0.0, %v412_v14  ;;  %v400_v16 = vpop.xlane.xlu0 %399  ;;  %s509_s11 = scalar_lea.sflag (%p179_p9), [#allocation8], %s1230_s8  ;;  %s814_s15 = scalar_lea.vmem (%p179_p9), %s522_s10, 16 }
 0x113   : >> { %v1155_v18 = vmul.f32 -1.0, %v400_v16  ;;  %p815_p10 = scmp.ne.s32.totalorder (%p179_p9), %s522_s10, %s814_s15  ;;  %s909_s1 = smov (%p179_p9), [#allocation11]  }
 0x114   : >> { %v423_v17 = vmul.f32 1.442695, %v417_v15  ;;  %s818_s7 = sshll.u32 (%p179_p9), %s909_s1, 4  ;;  %s819_s7 = int_to_ptr.vmem [resolvable:$false] %s818_s7 }
 0x115   : >> { %v415_v19 = vand.u32 2147483647, %v1155_v18  ;;  %v410_v13 = vmin.f32 %v1155_v18, 0.0  ;;  %p816_p12 = pnand (%p179_p9), %p815_p10, %p979_p5  ;;  %s820_s12 = scalar_lea.vmem (%p179_p9), %s819_s7, 32 }
 0x116   : >> { %732 = vpow2.f32 %v423_v17  ;;  %p821_p11 = scmp.lt.s32.totalorder (%p179_p9), %s522_s10, %s819_s7  ;;  %p822_p0 = scmp.lt.s32.totalorder (%p179_p9), %s820_s12, %s814_s15 }
 0x117   : >> { %v420_v21 = vsub.f32 0.0, %v415_v19  ;;  %v731_v25 = vpop.eup %730  ;;  %p817_p8 = pneg (%p179_p9), %p816_p12 }
 0x118   : >> { %v458_v27 = vadd.f32 1.0, %v731_v25  ;;  %v461_v36 = vmul.f32 -0.5, %v731_v25  ;;  %v464_v48 = vand.u32 2147483647, %v731_v25  ;;  %p823_p1 = por (%p179_p9), %p822_p0, %p821_p11 }
 0x119   : >> { %v429_v24 = vmul.f32 1.442695, %v420_v21 }
 0x11a   : >> { %v462_v46 = vadd.f32 1.0, %v461_v36  ;;  %vm465_vm6 = vcmp.lt.f32.partialorder %v464_v48, 0.0004427343  ;;  %p824_p3 = pnand (%p179_p9), %p823_p1, %p817_p8 }
 0x11b   : >> { %734 = vpow2.f32 %v429_v24 }
 0x11c   : >> { %736 = vlog2.f32 %v431_v23  ;;  %v463_v58 = vmul.f32 %v731_v25, %v462_v46 }
 0x11d   : >> { %738 = vlog2.f32 %v449_v26 }
 0x11e   : >> { %740 = vlog2.f32 %v458_v27 }
 0x123   : >> { %v733_v28 = vpop.eup %732 }
 0x124   : >> { %v440_v29 = vadd.f32 1.0, %v733_v28  ;;  %v443_v37 = vmul.f32 -0.5, %v733_v28  ;;  %v446_v49 = vand.u32 2147483647, %v733_v28 }
 0x126   : >> { %742 = vlog2.f32 %v440_v29  ;;  %v444_v47 = vadd.f32 1.0, %v443_v37  ;;  %vm447_vm7 = vcmp.lt.f32.partialorder %v446_v49, 0.0004427343 }
 0x128   : >> { %v735_v31 = vpop.eup %734  ;;  %v445_v62 = vmul.f32 %v733_v28, %v444_v47 }
 0x129   : >> { %v467_v33 = vadd.f32 1.0, %v735_v31  ;;  %v737_v34 = vpop.eup %736  ;;  %v470_v53 = vmul.f32 -0.5, %v735_v31  ;;  %v473_v10 = vand.u32 2147483647, %v735_v31 }
 0x12a   : >> { %v739_v38 = vpop.eup %738  ;;  %v433_v41 = vmul.f32 0.6931472, %v737_v34 }
 0x12b   : >> { %744 = vlog2.f32 %v467_v33  ;;  %v741_v42 = vpop.eup %740  ;;  %v451_v44 = vmul.f32 0.6931472, %v739_v38  ;;  %v471_v7 = vadd.f32 1.0, %v470_v53  ;;  %vm474_vm9 = vcmp.lt.f32.partialorder %v473_v10, 0.0004427343 }
 0x12c   : >> { %v439_v51 = vsel %vm438_vm4, %v436_v45, %v433_v41  ;;  %v460_v52 = vmul.f32 0.6931472, %v741_v42 }
 0x12d   : >> { %v457_v57 = vsel %vm456_vm5, %v454_v50, %v451_v44  ;;  %v476_v63 = vsub.f32 %v406_v56, %v439_v51  ;;  %v472_v16 = vmul.f32 %v735_v31, %v471_v7 }
 0x12e   : >> { %v466_v1 = vsel %vm465_vm6, %v463_v58, %v460_v52  ;;  %v478_v8 = vsub.f32 %v408_v55, %v457_v57 }
 0x12f   : >> { %v482_v60 = vsel %vm481_vm8, %v476_v63, 0.0  ;;  %v479_v12 = vsub.f32 %v409_v9, %v466_v1 }
 0x130   : >> { %v485_v19 = vsel %vm481_vm8, %v478_v8, 0.0 }
 0x131   : >> { %v487_v22 = vsel %vm481_vm8, %v479_v12, 0.0 }
 0x133   : >> { %v743_v54 = vpop.eup %742 }
 0x134   : >> { %v442_v59 = vmul.f32 0.6931472, %v743_v54 }
 0x136   : >> { %v448_v6 = vsel %vm447_vm7, %v445_v62, %v442_v59 }
 0x137   : >> { %v477_v61 = vsub.f32 %v407_v0, %v448_v6 }
 0x138   : >> { %v745_v11 = vpop.eup %744 }
 0x139   : >> { %v483_v14 = vsel %vm481_vm8, %v477_v61, 0.0  ;;  %v469_v15 = vmul.f32 0.6931472, %v745_v11 }
 0x13a   : >> { %v484_v17 = vadd.f32 %v483_v14, %v482_v60 }
 0x13b   : >> { %v475_v20 = vsel %vm474_vm9, %v472_v16, %v469_v15 }
 0x13c   : >> { %v486_v21 = vadd.f32 %v485_v19, %v484_v17  ;;  %v480_v3 = vsub.f32 %v410_v13, %v475_v20 }
 0x13e   : >> { %v488_v23 = vadd.f32 %v487_v22, %v486_v21  ;;  %v490_v24 = vsel %vm489_vm10, %v480_v3, 0.0 }
 0x140   : >> { %v491_v25 = vadd.f32 %v490_v24, %v488_v23 }
 0x142   : >> { %492 = vadd.xlane.f32.xlu1 %v491_v25 }
 0x1cb   : >> { %v493_v26 = vpop.xlane.xlu1 %492 }
 0x1cc   : >> { %v494_v27 = vrot.slane %v493_v26, 4 }
 0x1ce   : >> { %v495_v28 = vadd.f32 %v494_v27, %v493_v26 }
 0x1d0   : >> { %v496_v29 = vrot.slane %v495_v28, 2 }
 0x1d2   : >> { %v497_v30 = vadd.f32 %v496_v29, %v495_v28 }
 0x1d4   : >> { %v498_v18 = vrot.slane %v497_v30, 1 }
 0x1d6   : >> { %v499_v31 = vadd.f32 %v498_v18, %v497_v30 }
 0x1d8   : >> { %643 = vpush %v499_v31 }
 0x209   : >> { %s644_s14 = spop %643 }
 0x20a   : >> { %s501_s17 = ssub.f32 0.0, %s644_s14  ;;  %181 = sbr.rel (!%p179_p9) target bundleno = 63 (0x3f), region = 113 }
 0x20c   : >> { %v504_v33 = vstv %s501_s17 }
 0x20d   : >> { %v505_v34 = vsel %vm503_vm11, %v504_v33, %v896_v5  }
 0x20e   : >> { %v1229_v5 = vmov %v505_v34  ;;  %507 = vst.msk [vmem:[%s1037_s20] sm:$0x1] (%p179_p9), %vm506_vm12, %v505_v34 }
 0x20f   : > { %827 = shalt.err (!%p824_p3)
}
 0x210   : > { %s828_s0 = scalar_lea.hbm %s519_s16, 16  ;;  %s832_s18 = scalar_lea.hbm %s1215_s4, 48 }
 0x211   : > { %p829_p2 = scmp.ne.s32.totalorder %s519_s16, %s828_s0  ;;  %p833_p7 = scmp.lt.s32.totalorder %s519_s16, %s1215_s4 }
 0x212   : > { %p834_p6 = scmp.lt.s32.totalorder %s832_s18, %s828_s0 }
 0x213   : > { %p830_p4 = pnand %p829_p2, %p979_p5 }
 0x214   : > { %p835_p9 = por %p834_p6, %p833_p7 }
 0x215   : > { %p831_p13 = pneg %p830_p4 }
 0x217   : > { %p836_p10 = pnand %p835_p9, %p831_p13 }
 0x219   : > { %839 = shalt.err (!%p836_p10)
}
 0x21a   : > { %653 = dma.vmem_to_hbm [thread:$0]  (%p979_p5), %s522_s10, 16, %s519_s16, %s509_s11  }
 0x21b PF: > { %p670_p12 = scmp.ge.s32.totalorder %s892_s24, 2  ;;  %s533_s13 = sand.u32 1, %s880_s21  }
 0x21c   : > { %p1231_p8 = scmp.ne.s32.totalorder %s1221_s30, 0  ;;  %s534_s19 = scalar_lea.sflag [#allocation8], %s533_s13 }
 0x21e   : > { %p663_p11 = pnand %p670_p12, %p1231_p8 }
 0x220   : > { %p664_p0 = pneg %p663_p11 }
 0x222   : > { %875 = dma.done.wait (%p664_p0), %s534_s19, 16  }
 0x223   : > { %877 = vsyncadd (%p664_p0), %s534_s19, 4294967280  ;;  %p22_p1 = scmp.ge.s32.totalorder %s966_s25, 5   ;;  %s1232_s21 = smov %s884_s22 }
 0x224   : > { %s1233_s22 = smov %s888_s23  ;;  %s1234_s23 = smov %s977_s28 }
 0x225   : > { %s1235_s24 = smov %s966_s25  ;;  %24 = sbr.rel (!%p22_p1) target bundleno = 12 (0xc), region = 124 }
 0x22a   :  { %538 = vsyncpa [#allocation7], 1 }
 0x22b   :  { %540 = vsyncpa [#allocation7 + $0x1], 1 }
 0x22c   :  { %541 = vsyncpa [#allocation10], 1 }
 0x22d   :  { %542 = vsyncpa [#allocation8], 1 }
 0x22e   :  { %544 = vsyncpa [#allocation8 + $0x1], 1 }

</bundles_post_ra>
